<compile_context>
chip_gen: v7x
topology: tpu7x:2x2x1
jax: 0.10.0
libtpu: 0.0.40
codegen_flags: <defaults>
</compile_context>

<pallas_src>
import numpy as np
import jax
import jax.numpy as jnp
from jax import lax
from jax.experimental import pallas as pl
from jax.experimental.pallas import tpu as pltpu


def _round_up(x, mult):
    return ((x + mult - 1) // mult) * mult


def _masked_gram_kernel(x_ref, xlhs_ref, oh_ref, out_ref, xm_ref):
    # x_ref:    (tm, p_pad)    full-width sample tile for this m-block
    # xlhs_ref: (tm, tp)       lane strip of the same samples (columns of this p-block)
    # oh_ref:   (tm, k)        one-hot class membership for this m-block
    # out_ref:  (tp, k*p_pad)  f32 Gram slab, resident across the m (reduction) axis
    # xm_ref:   (tm, k*p_pad)  VMEM scratch holding the wide masked RHS
    s = pl.program_id(1)

    # Accumulate directly into the resident f32 output slab (no acc scratch).
    @pl.when(s == 0)
    def _():
        out_ref[...] = jnp.zeros_like(out_ref)

    x = x_ref[...]                        # (tm, p_pad)
    oh = oh_ref[...]                      # (tm, k)
    k = oh.shape[1]
    p_pad = x.shape[1]                    # multiple of 128

    # Wide masked RHS built with k lane-aligned (128-multiple) slab stores:
    # block j holds Pi_j @ X_tile (per-sample mask broadcast over lanes).
    for j in range(k):
        xm_ref[:, j * p_pad:(j + 1) * p_pad] = x * oh[:, j:j + 1]

    # Transposed-LHS contraction: (tm, tp)^T @ (tm, k*p_pad) -> (tp, k*p_pad).
    out_ref[...] += lax.dot_general(
        xlhs_ref[...], xm_ref[...],
        dimension_numbers=(((0,), (0,)), ((), ())),
        preferred_element_type=jnp.float32)


def fused_masked_grams(x, onehot, *, use_bf16=True, tm_max=None):
    """Returns the (k, p, p) stack G[j] = X^T @ Pi_j @ X via one fused Pallas matmul."""
    m, p = x.shape
    k = onehot.shape[1]

    compute_dtype = jnp.bfloat16 if use_bf16 else jnp.float32
    ebytes = 2 if use_bf16 else 4

    # Lane-pad the feature axis; zero feature columns only add zero rows/cols
    # to every Gram, which are sliced away below.
    p_pad = _round_up(p, 128)
    kp = k * p_pad

    # p-tile: guarantee >= 2 blocks on the "parallel" axis whenever possible
    # (v7x has 2 TensorCores; perf-neutral on v5e/v6e).
    tp = 128 if p_pad >= 256 else p_pad

    # m-tile from a ~40 MiB VMEM budget (fits v7x's 64 MiB physical VMEM);
    # shrink tm rather than tp when k*p is large.
    budget = 40 * 1024 * 1024

    def _need(tm_c):
        return (tm_c * kp * ebytes                        # xm scratch
                + 2 * tp * kp * 4                         # resident f32 out slab (+spare)
                + 2 * tm_c * p_pad * ebytes               # full-width X tile, double buffered
                + 2 * tm_c * tp * ebytes                  # LHS strip, double buffered
                + 2 * tm_c * _round_up(k, 128) * ebytes)  # one-hot tile, double buffered

    tm = 128
    for cand in (512, 256, 128):
        if _need(cand) <= budget:
            tm = cand
            break
    if tm_max is not None:
        tm = min(tm, _round_up(max(int(tm_max), 16), 16))

    if m <= tm:
        tm = _round_up(m, 16)
        m_pad = tm
    else:
        m_pad = _round_up(m, tm)

    if (m_pad != m) or (p_pad != p):
        x = jnp.pad(x, ((0, m_pad - m), (0, p_pad - p)))
        onehot = jnp.pad(onehot, ((0, m_pad - m), (0, 0)))

    x = x.astype(compute_dtype)           # bf16 operands, f32 MXU accumulation
    onehot = onehot.astype(compute_dtype)  # 0/1 mask is exact in bf16

    # Raise the scoped VMEM limit above the v5e (16 MiB) / v6e-v7x (32 MiB)
    # defaults, while staying under v7x's 64 MiB physical VMEM.
    vmem_limit = int(min(56 * 2 ** 20, max(32 * 2 ** 20, 2 * _need(tm))))

    grid = (p_pad // tp, m_pad // tm)

    # TODO(synk): if profiling shows DMA exposure at small tm, sweep
    # pipeline_mode=pl.Buffered(3) on the X input specs (kept at default depth
    # 2 here to preserve v7x VMEM headroom).
    g_wide = pl.pallas_call(
        _masked_gram_kernel,
        out_shape=jax.ShapeDtypeStruct((p_pad, kp), jnp.float32),
        grid_spec=pltpu.PrefetchScalarGridSpec(
            num_scalar_prefetch=0,
            grid=grid,
            in_specs=[
                pl.BlockSpec((tm, p_pad), lambda i, s: (s, 0)),  # full-width X tile
                pl.BlockSpec((tm, tp), lambda i, s: (s, i)),     # X lane strip = MXU LHS
                pl.BlockSpec((tm, k), lambda i, s: (s, 0)),      # one-hot tile
            ],
            out_specs=pl.BlockSpec((tp, kp), lambda i, s: (i, 0)),
            scratch_shapes=[pltpu.VMEM((tm, kp), compute_dtype)],
        ),
        compiler_params=pltpu.CompilerParams(
            dimension_semantics=("parallel", "arbitrary"),
            vmem_limit_bytes=vmem_limit,
        ),
    )(x, x, onehot)

    # (p_pad, k*p_pad) -> (k, p_pad, p_pad), then drop the zero padding.
    g_cls = jnp.transpose(g_wide.reshape(p_pad, k, p_pad), (1, 0, 2))
    return g_cls[:, :p, :p]


def mcr_forward(X, Y, num_classes=None, gam1=1.0, gam2=1.0, eps=0.01,
                use_bf16=True, tm_max=None):
    """Replicates MaximalCodingRateReduction.forward; returns (total_loss_empi, 0, 0).

    Precondition: labels lie in [0, num_classes), so the per-class masks
    partition the samples and sum_j G_j == W @ W.T (the discriminative Gram
    needs no extra pass).
    """
    X = jnp.asarray(X, jnp.float32)
    Y = jnp.asarray(Y, jnp.int32)
    m, p = X.shape
    if num_classes is None:
        num_classes = int(jnp.max(Y)) + 1
    k = int(num_classes)

    # One-hot membership (equivalent to label_to_membership's diagonal Pi).
    onehot = (Y[:, None] == jnp.arange(k)[None, :]).astype(jnp.float32)   # (m, k)

    g_cls = fused_masked_grams(X, onehot, use_bf16=use_bf16, tm_max=tm_max)  # (k, p, p)
    g_total = jnp.sum(g_cls, axis=0)                                         # == W @ W.T

    I = jnp.eye(p, dtype=jnp.float32)

    # TODO(synk): logdet (LU/Cholesky factorization) has no clean Pallas
    # equivalent; the small (p, p) slogdets are evaluated in plain JAX.
    scalar_d = p / (m * eps)
    _, logdet_d = jnp.linalg.slogdet(I + gam1 * scalar_d * g_total)
    discrimn_loss = logdet_d / 2.0

    trPi = jnp.sum(onehot, axis=0) + 1e-08                                # (k,)
    scalar_c = p / (trPi * eps)                                           # (k,)
    mats = I[None, :, :] + scalar_c[:, None, None] * g_cls                # (k, p, p)
    _, logdets = jnp.linalg.slogdet(mats)                                 # (k,)
    compress_loss = jnp.sum(logdets * trPi / float(m)) / 2.0

    total_loss_empi = gam2 * (-discrimn_loss) + compress_loss
    return total_loss_empi, 0, 0


# ---------------------------------------------------------------------------
# Float64 numpy references for validation.
# ---------------------------------------------------------------------------
def _numpy_gram_reference(Xn, Yn, k):
    m, p = Xn.shape
    G = np.zeros((k, p, p))
    for j in range(k):
        mask = (Yn == j).astype(np.float64)
        G[j] = (Xn * mask[:, None]).T @ Xn
    return G


def _numpy_loss_reference(Xn, Yn, k, gam1=1.0, gam2=1.0, eps=0.01):
    m, p = Xn.shape
    I = np.eye(p)
    G = _numpy_gram_reference(Xn, Yn, k)
    d = 0.5 * np.linalg.slogdet(I + gam1 * (p / (m * eps)) * G.sum(0))[1]
    c = 0.0
    for j in range(k):
        tr = float((Yn == j).sum()) + 1e-08
        c += np.linalg.slogdet(I + (p / (tr * eps)) * G[j])[1] * tr / m
    return gam2 * (-d) + c / 2.0


if __name__ == "__main__":
    root = jax.random.PRNGKey(0)
    k1, k2, k3, k4 = jax.random.split(root, 4)

    # ---- Case 1: p not a lane multiple (exercises the 48 -> 128 padding),
    # single m tile, single p block.
    m1, p1, nc1 = 192, 48, 3
    X1 = jax.random.normal(k1, (m1, p1), dtype=jnp.float32)
    Y1 = jax.random.randint(k2, (m1,), 0, nc1, dtype=jnp.int32)

    oh1 = (Y1[:, None] == jnp.arange(nc1)[None, :]).astype(jnp.float32)
    g1 = np.asarray(jax.block_until_ready(fused_masked_grams(X1, oh1)), np.float64)
    g1_ref = _numpy_gram_reference(np.asarray(X1, np.float64), np.asarray(Y1), nc1)
    tol1 = 2e-2 * np.abs(g1_ref).max() + 1e-3           # bf16-operand tolerance
    assert np.max(np.abs(g1 - g1_ref)) <= tol1, np.max(np.abs(g1 - g1_ref))

    loss1, _, _ = mcr_forward(X1, Y1, nc1)
    loss1 = float(jax.block_until_ready(loss1))
    ref1 = _numpy_loss_reference(np.asarray(X1, np.float64), np.asarray(Y1), nc1)
    assert abs(loss1 - ref1) <= 0.5 + 2e-2 * abs(ref1), (loss1, ref1)

    # ---- Case 2: m-tiled accumulation path (8 reduction steps of tm=128) and
    # two blocks on the parallel p axis (p_pad = 256 -> tp = 128).
    m2, p2, nc2 = 1024, 160, 4
    X2 = jax.random.normal(k3, (m2, p2), dtype=jnp.float32)
    Y2 = jax.random.randint(k4, (m2,), 0, nc2, dtype=jnp.int32)

    oh2 = (Y2[:, None] == jnp.arange(nc2)[None, :]).astype(jnp.float32)
    g2 = np.asarray(jax.block_until_ready(
        fused_masked_grams(X2, oh2, tm_max=128)), np.float64)
    g2_ref = _numpy_gram_reference(np.asarray(X2, np.float64), np.asarray(Y2), nc2)
    tol2 = 2e-2 * np.abs(g2_ref).max() + 1e-3
    assert np.max(np.abs(g2 - g2_ref)) <= tol2, np.max(np.abs(g2 - g2_ref))

    loss2, _, _ = mcr_forward(X2, Y2, nc2, tm_max=128)
    loss2 = float(jax.block_until_ready(loss2))
    ref2 = _numpy_loss_reference(np.asarray(X2, np.float64), np.asarray(Y2), nc2)
    assert abs(loss2 - ref2) <= 0.5 + 2e-2 * abs(ref2), (loss2, ref2)

    print("KERNEL_OK")
</pallas_src>

<mosaic_0001>
module attributes {stable_mosaic.version = 11 : i64} {
  func.func @_masked_gram_kernel(%arg0: i32, %arg1: i32, %arg2: memref<192x128xbf16, #tpu.memory_space<vmem>>, %arg3: memref<192x128xbf16, #tpu.memory_space<vmem>>, %arg4: memref<192x3xbf16, #tpu.memory_space<vmem>>, %arg5: memref<128x384xf32, #tpu.memory_space<vmem>>, %arg6: memref<192x384xbf16, #tpu.memory_space<vmem>>) attributes {dimension_semantics = [#tpu.dimension_semantics<parallel>, #tpu.dimension_semantics<arbitrary>], iteration_bounds = array<i64: 1, 1>, scalar_prefetch = 0 : i64, scratch_operands = 1 : i64, tpu.core_type = #tpu.core_type<tc>, window_params = [{transform_indices = @transform_0, window_bounds = array<i64: 192, 128>}, {transform_indices = @transform_1, window_bounds = array<i64: 192, 128>}, {transform_indices = @transform_2, window_bounds = array<i64: 192, 3>}, {transform_indices = @transform_3, window_bounds = array<i64: 128, 384>}]} {
    %c0_i32 = arith.constant 0 : i32
    %0 = arith.cmpi eq, %arg1, %c0_i32 : i32
    %1 = arith.extui %0 : i1 to i32
    %c0_i32_0 = arith.constant 0 : i32
    %2 = arith.cmpi ne, %1, %c0_i32_0 : i32
    scf.if %2 {
      %cst_16 = arith.constant 0.000000e+00 : f32
      %23 = vector.broadcast %cst_16 : f32 to vector<128x384xf32>
      %c0_17 = arith.constant 0 : index
      %c0_18 = arith.constant 0 : index
      %24 = vector.load %arg5[%c0_17, %c0_18] : memref<128x384xf32, #tpu.memory_space<vmem>>, vector<128x384xf32>
      tpu.vector_store %arg5[%c0_17, %c0_18], %23 {strides = array<i32>} : memref<128x384xf32, #tpu.memory_space<vmem>>, vector<128x384xf32>,
    } else {
    }
    %c0 = arith.constant 0 : index
    %c0_1 = arith.constant 0 : index
    %3 = vector.load %arg2[%c0, %c0_1] : memref<192x128xbf16, #tpu.memory_space<vmem>>, vector<192x128xbf16>
    %c0_2 = arith.constant 0 : index
    %c0_3 = arith.constant 0 : index
    %4 = vector.load %arg4[%c0_2, %c0_3] : memref<192x3xbf16, #tpu.memory_space<vmem>>, vector<192x3xbf16>
    %5 = vector.extract_strided_slice %4 {offsets = [0, 0], sizes = [192, 1], strides = [1, 1]} : vector<192x3xbf16> to vector<192x1xbf16>
    %6 = vector.broadcast %5 : vector<192x1xbf16> to vector<192x128xbf16>
    %7 = arith.mulf %3, %6 : vector<192x128xbf16>
    %c0_4 = arith.constant 0 : index
    %c0_5 = arith.constant 0 : index
    %8 = vector.load %arg6[%c0_4, %c0_5] : memref<192x384xbf16, #tpu.memory_space<vmem>>, vector<192x128xbf16>
    tpu.vector_store %arg6[%c0_4, %c0_5], %7 {strides = array<i32>} : memref<192x384xbf16, #tpu.memory_space<vmem>>, vector<192x128xbf16>,
    %9 = vector.extract_strided_slice %4 {offsets = [0, 1], sizes = [192, 1], strides = [1, 1]} : vector<192x3xbf16> to vector<192x1xbf16>
    %10 = vector.broadcast %9 : vector<192x1xbf16> to vector<192x128xbf16>
    %11 = arith.mulf %3, %10 : vector<192x128xbf16>
    %c0_6 = arith.constant 0 : index
    %c128 = arith.constant 128 : index
    %12 = vector.load %arg6[%c0_6, %c128] : memref<192x384xbf16, #tpu.memory_space<vmem>>, vector<192x128xbf16>
    tpu.vector_store %arg6[%c0_6, %c128], %11 {strides = array<i32>} : memref<192x384xbf16, #tpu.memory_space<vmem>>, vector<192x128xbf16>,
    %13 = vector.extract_strided_slice %4 {offsets = [0, 2], sizes = [192, 1], strides = [1, 1]} : vector<192x3xbf16> to vector<192x1xbf16>
    %14 = vector.broadcast %13 : vector<192x1xbf16> to vector<192x128xbf16>
    %15 = arith.mulf %3, %14 : vector<192x128xbf16>
    %c0_7 = arith.constant 0 : index
    %c256 = arith.constant 256 : index
    %16 = vector.load %arg6[%c0_7, %c256] : memref<192x384xbf16, #tpu.memory_space<vmem>>, vector<192x128xbf16>
    tpu.vector_store %arg6[%c0_7, %c256], %15 {strides = array<i32>} : memref<192x384xbf16, #tpu.memory_space<vmem>>, vector<192x128xbf16>,
    %c0_8 = arith.constant 0 : index
    %c0_9 = arith.constant 0 : index
    %17 = vector.load %arg5[%c0_8, %c0_9] : memref<128x384xf32, #tpu.memory_space<vmem>>, vector<128x384xf32>
    %c0_10 = arith.constant 0 : index
    %c0_11 = arith.constant 0 : index
    %18 = vector.load %arg3[%c0_10, %c0_11] : memref<192x128xbf16, #tpu.memory_space<vmem>>, vector<192x128xbf16>
    %c0_12 = arith.constant 0 : index
    %c0_13 = arith.constant 0 : index
    %19 = vector.load %arg6[%c0_12, %c0_13] : memref<192x384xbf16, #tpu.memory_space<vmem>>, vector<192x384xbf16>
    %cst = arith.constant dense<0.000000e+00> : vector<128x384xf32>
    %20 = tpu.matmul %18, %19, %cst {dimension_numbers = #tpu.dot_dimension_numbers<[0], [0], [1], [1], [0, 1, 1, 1], [], []>} : vector<192x128xbf16>, vector<192x384xbf16>, vector<128x384xf32> -> vector<128x384xf32>
    %21 = arith.addf %17, %20 : vector<128x384xf32>
    %c0_14 = arith.constant 0 : index
    %c0_15 = arith.constant 0 : index
    %22 = vector.load %arg5[%c0_14, %c0_15] : memref<128x384xf32, #tpu.memory_space<vmem>>, vector<128x384xf32>
    tpu.vector_store %arg5[%c0_14, %c0_15], %21 {strides = array<i32>} : memref<128x384xf32, #tpu.memory_space<vmem>>, vector<128x384xf32>,
    return
  }
  func.func @transform_0(%arg0: i32, %arg1: i32) -> (i32, i32) {
    %c0_i32 = arith.constant 0 : i32
    %c0_i32_0 = arith.constant 0 : i32
    return %arg1, %c0_i32 : i32, i32
  }
  func.func @transform_1(%arg0: i32, %arg1: i32) -> (i32, i32) {
    %c0_i32 = arith.constant 0 : i32
    return %arg1, %arg0 : i32, i32
  }
  func.func @transform_2(%arg0: i32, %arg1: i32) -> (i32, i32) {
    %c0_i32 = arith.constant 0 : i32
    %c0_i32_0 = arith.constant 0 : i32
    return %arg1, %c0_i32 : i32, i32
  }
  func.func @transform_3(%arg0: i32, %arg1: i32) -> (i32, i32) {
    %c0_i32 = arith.constant 0 : i32
    %c0_i32_0 = arith.constant 0 : i32
    return %arg0, %c0_i32 : i32, i32
  }
}

</mosaic_0001>

<bundles_post_ra>
// kernel: tpu_custom_call.1
= control target key start
LH: loop header
LB: loop body
LE: loop exit
PB: predicated region body
PF: predicated region fallthrough
CT: control target
= control target key end

     0   :  { %8 = vsyncpa [#allocation4], 0  ;;  %s2454_s0 = inlined_call_operand.vmem [shape: bf16[192,128], index: 0, kind: input, shape index: {}]   ;;  %s2455_s1 = inlined_call_operand.hbm [shape: bf16[192,128], index: 1, kind: input, shape index: {}]   ;;  %s2456_s2 = inlined_call_operand.vmem [shape: bf16[192,3], index: 2, kind: input, shape index: {}]   ;;  %s2457_s3 = inlined_call_operand.hbm [shape: f32[128,384], index: 3, kind: output, shape index: {}]  }
   0x1   :  { %9 = vsyncpa [#allocation5], 0  ;;  %s2002_s12 = smov [#allocation3]   ;;  %s1954_s16 = scalar_lea.hbm %s2455_s1, 1536 }
   0x2   :  { %s17_s13 = sshll.u32 %s2002_s12, 4  ;;  %p1955_p0 = scmp.ne.s32.totalorder %s2455_s1, %s1954_s16  ;;  %s18_s13 = int_to_ptr.vmem [resolvable:$true] %s17_s13 }
   0x3   :  { %p1958_p1 = scmp.lt.u32.totalorder %s1954_s16, %s2455_s1 }
   0x5   :  { %p1960_p2 = pnand %p1958_p1, %p1955_p0 }
   0x7   :  { %1963 = shalt.err (!%p1960_p2)
}
   0x8   :  { %s1964_s21 = scalar_lea.vmem %s18_s13, 1536  ;;  %p1969_p4 = scmp.lt.s32.totalorder %s18_s13, %s18_s13 }
   0x9   :  { %p1965_p3 = scmp.ne.s32.totalorder %s18_s13, %s1964_s21  ;;  %p1970_p5 = scmp.lt.s32.totalorder %s1964_s21, %s1964_s21 }
   0xb   :  { %p1971_p6 = por %p1970_p5, %p1969_p4 }
   0xd   :  { %p1972_p7 = pnand %p1971_p6, %p1965_p3 }
   0xf   :  { %1975 = shalt.err (!%p1972_p7)
}
  0x10   :  { %s2003_s22 = smov 64   ;;  %s2004_s23 = smov 4  }
  0x11   :  { %23 = dma.hbm_to_vmem [thread:$0]  %s2455_s1, 1536, %s18_s13, [#allocation4], %s2003_s22, %s2003_s22, %s2004_s23  }
  0x12   :  { %1998 = dma.done.wait [#allocation4], 1536  }
  0x13   :  { %1999 = vsyncadd [#allocation4], 4294965760  ;;  %v2005_v0 = vmov 1   ;;  %v2006_v1 = vmov 0   ;;  %v106_v2 = vld [vmem:[%s2456_s2] sm:$0xf]  ;;  %v138_v29 = vlaneseq }
  0x14   :  { %1905 = vset.pattern.permute.xlu0 %v2005_v0  ;;  %1906 = vset.pattern.permute.xlu1 %v2006_v1  ;;  %v107_v3 = vld [vmem:[%s2456_s2 + $0x4] sm:$0xf]  ;;  %v109_v4 = vld [vmem:[%s2456_s2 + $0xc] sm:$0xf]  ;;  %v111_v5 = vld [vmem:[%s2456_s2 + $0x14] sm:$0xf] }
  0x15   :  { %1620 = vmatprep.subr.bf16.mxu1 %v2006_v1  ;;  %132 = vperm.xlu1 %1906, %v106_v2   ;;  %v2007_v6 = vmov 2   ;;  %v108_v7 = vld [vmem:[%s2456_s2 + $0x8] sm:$0xf]  ;;  %v113_v8 = vld [vmem:[%s2456_s2 + $0x1c] sm:$0xf]  ;;  %v139_v31 = vshrl.u32 %v138_v29, 7 }
  0x16   :  { %527 = vperm.xlu0 %1905, %v106_v2   ;;  %v115_v9 = vld [vmem:[%s2456_s2 + $0x24] sm:$0xf]  ;;  %v2074_v10 = vld [vmem:[%s2456_s2 + $0x2c] sm:$0xf]  ;;  %v2080_v11 = vld [vmem:[%s2456_s2 + $0x34] sm:$0xf] }
  0x17   :  { %v2087_v12 = vld [vmem:[%s2456_s2 + $0x3c] sm:$0xf]  ;;  %v110_v13 = vld [vmem:[%s2456_s2 + $0x10] sm:$0xf]  ;;  %v2097_v14 = vld [vmem:[%s2456_s2 + $0x44] sm:$0xf] }
  0x18   :  { %v2104_v15 = vld [vmem:[%s2456_s2 + $0x4c] sm:$0xf]  ;;  %v2110_v16 = vld [vmem:[%s2456_s2 + $0x54] sm:$0xf]  ;;  %v2116_v17 = vld [vmem:[%s2456_s2 + $0x5c] sm:$0xf] }
  0x19   :  { %144 = vperm.xlu1 %1906, %v107_v3   ;;  %v112_v18 = vld [vmem:[%s2456_s2 + $0x18] sm:$0xf]  ;;  %v114_v19 = vld [vmem:[%s2456_s2 + $0x20] sm:$0xf]  ;;  %v116_v20 = vld [vmem:[%s2456_s2 + $0x28] sm:$0xf] }
  0x1a   :  { %538 = vperm.xlu0 %1905, %v107_v3   ;;  %v118_v21 = vld [vmem:[%s2456_s2 + $0x30] sm:$0xf]  ;;  %v120_v22 = vld [vmem:[%s2456_s2 + $0x38] sm:$0xf]  ;;  %v2145_v23 = vld [vmem:[%s2456_s2 + $0x40] sm:$0xf] }
  0x1b   :  { %v2151_v24 = vld [vmem:[%s2456_s2 + $0x48] sm:$0xf]  ;;  %v2158_v25 = vld [vmem:[%s2456_s2 + $0x50] sm:$0xf]  ;;  %v2165_v26 = vld [vmem:[%s2456_s2 + $0x58] sm:$0xf] }
  0x1c   :  { %v2008_v27 = vmov 839922192   ;;  %v1943_v32 = vld [vmem:[#allocation3] sm:$0xff]   ;;  %v1945_v37 = vld [vmem:[#allocation3 + $0x8] sm:$0xff]   ;;  %v1947_v46 = vld [vmem:[#allocation3 + $0x10] sm:$0xff]   ;;  %vm1482_vm0 = vcmask 523264  }
  0x1d   :  { %1907 = vset.pattern.permute.xlu1 %v2007_v6  ;;  %v136_v28 = vunpack.c.l.s4 %v2008_v27  ;;  %v2184_v39 = vld [vmem:[%s2454_s0] sm:$0xf]  ;;  %v2189_v41 = vld [vmem:[%s2454_s0 + $0x4] sm:$0xf]  ;;  %v1949_v54 = vld [vmem:[#allocation3 + $0x18] sm:$0xff]  }
  0x1e   :  { %560 = vperm.xlu0 %1905, %v109_v4   ;;  %910 = vperm.xlu1 %1907, %v107_v3   ;;  %v2205_v56 = vld [vmem:[%s2454_s0 + $0xc] sm:$0xf]  ;;  %v1950_v58 = vld [vmem:[#allocation3 + $0x20] sm:$0xff]   ;;  %v2211_v60 = vld [vmem:[%s2454_s0 + $0x8] sm:$0xf] }
  0x1f   :  { %v137_v30 = vunpack.c.0.s8 %v136_v28  ;;  %v1951_v3 = vld [vmem:[#allocation3 + $0x28] sm:$0xff]   ;;  %v2238_v28 = vld [vmem:[%s2454_s0 + $0x14] sm:$0xf] }
  0x21   :  { %v2176_v33 = vsub.s32 %v137_v30, %v139_v31  ;;  %v2246_v30 = vld [vmem:[%s2454_s0 + $0x10] sm:$0xf] }
  0x22   :  { %582 = vperm.xlu0 %1905, %v111_v5   ;;  %1908 = vset.pattern.permute.xlu1 %v2005_v0 }
  0x23   :  { %549 = vperm.xlu1 %1908, %v108_v7  }
  0x26   :  { %604 = vperm.xlu0 %1905, %v113_v8  }
  0x27   :  { %1909 = vset.pattern.permute.xlu1 %v2006_v1 }
  0x28   :  { %156 = vperm.xlu1 %1909, %v108_v7  }
  0x2a   :  { %626 = vperm.xlu0 %1905, %v115_v9  }
  0x2c   :  { %168 = vperm.xlu1 %1909, %v109_v4  }
  0x2e   :  { %648 = vperm.xlu0 %1905, %v2074_v10  }
  0x30   :  { %1910 = vset.pattern.permute.xlu1 %v2007_v6 }
  0x31   :  { %932 = vperm.xlu1 %1910, %v109_v4  }
  0x32   :  { %670 = vperm.xlu0 %1905, %v2080_v11  }
  0x35   :  { %1911 = vset.pattern.permute.xlu1 %v2005_v0 }
  0x36   :  { %692 = vperm.xlu0 %1905, %v2087_v12   ;;  %571 = vperm.xlu1 %1911, %v110_v13  }
  0x3a   :  { %714 = vperm.xlu0 %1905, %v2097_v14   ;;  %1912 = vset.pattern.permute.xlu1 %v2006_v1 }
  0x3b   :  { %180 = vperm.xlu1 %1912, %v110_v13  }
  0x3e   :  { %736 = vperm.xlu0 %1905, %v2104_v15  }
  0x3f   :  { %192 = vperm.xlu1 %1912, %v111_v5  }
  0x42   :  { %758 = vperm.xlu0 %1905, %v2110_v16  }
  0x43   :  { %1913 = vset.pattern.permute.xlu1 %v2007_v6 }
  0x44   :  { %954 = vperm.xlu1 %1913, %v111_v5  }
  0x46   :  { %780 = vperm.xlu0 %1905, %v2116_v17  }
  0x48   :  { %1914 = vset.pattern.permute.xlu1 %v2005_v0 }
  0x49   :  { %593 = vperm.xlu1 %1914, %v112_v18  }
  0x4a   :  { %1939 = vset.pattern.permute.xlu0 %v2007_v6 }
  0x4b   :  { %899 = vperm.xlu0 %1939, %v106_v2  }
  0x4d   :  { %1915 = vset.pattern.permute.xlu1 %v2006_v1 }
  0x4e   :  { %204 = vperm.xlu1 %1915, %v112_v18  }
  0x4f   :  { %921 = vperm.xlu0 %1939, %v108_v7  }
  0x52   :  { %216 = vperm.xlu1 %1915, %v113_v8  }
  0x53   :  { %943 = vperm.xlu0 %1939, %v110_v13   ;;  %v1953_v13 = vld [vmem:[#allocation3 + $0x38] sm:$0xff]  }
  0x56   :  { %1916 = vset.pattern.permute.xlu1 %v2007_v6 }
  0x57   :  { %965 = vperm.xlu0 %1939, %v112_v18   ;;  %976 = vperm.xlu1 %1916, %v113_v8   ;;  %v1952_v8 = vld [vmem:[#allocation3 + $0x30] sm:$0xff]  }
  0x5b   :  { %987 = vperm.xlu0 %1939, %v114_v19   ;;  %1917 = vset.pattern.permute.xlu1 %v2005_v0 }
  0x5c   :  { %615 = vperm.xlu1 %1917, %v114_v19  }
  0x5f   :  { %1009 = vperm.xlu0 %1939, %v116_v20  }
  0x60   :  { %1918 = vset.pattern.permute.xlu1 %v2006_v1 }
  0x61   :  { %228 = vperm.xlu1 %1918, %v114_v19  }
  0x63   :  { %1031 = vperm.xlu0 %1939, %v118_v21  }
  0x65   :  { %240 = vperm.xlu1 %1918, %v115_v9  }
  0x67   :  { %1053 = vperm.xlu0 %1939, %v120_v22  }
  0x69   :  { %1919 = vset.pattern.permute.xlu1 %v2007_v6 }
  0x6a   :  { %998 = vperm.xlu1 %1919, %v115_v9  }
  0x6b   :  { %1075 = vperm.xlu0 %1939, %v2145_v23  }
  0x6e   :  { %1920 = vset.pattern.permute.xlu1 %v2005_v0 }
  0x6f   :  { %1097 = vperm.xlu0 %1939, %v2151_v24   ;;  %637 = vperm.xlu1 %1920, %v116_v20  }
  0x73   :  { %1119 = vperm.xlu0 %1939, %v2158_v25   ;;  %1921 = vset.pattern.permute.xlu1 %v2006_v1 }
  0x74   :  { %252 = vperm.xlu1 %1921, %v116_v20  }
  0x77   :  { %1141 = vperm.xlu0 %1939, %v2165_v26  }
  0x78   :  { %264 = vperm.xlu1 %1921, %v2074_v10  }
  0x7c   :  { %1922 = vset.pattern.permute.xlu1 %v2007_v6 }
  0x7d   :  { %1020 = vperm.xlu1 %1922, %v2074_v10  }
  0x81   :  { %1923 = vset.pattern.permute.xlu1 %v2005_v0 }
  0x82   :  { %659 = vperm.xlu1 %1923, %v118_v21  }
  0x86   :  { %1924 = vset.pattern.permute.xlu1 %v2006_v1 }
  0x87   :  { %276 = vperm.xlu1 %1924, %v118_v21  }
  0x8b   :  { %288 = vperm.xlu1 %1924, %v2080_v11  }
  0x8f   :  { %1925 = vset.pattern.permute.xlu1 %v2007_v6 }
  0x90   :  { %1042 = vperm.xlu1 %1925, %v2080_v11  }
  0x94   :  { %1926 = vset.pattern.permute.xlu1 %v2005_v0  ;;  %v133_v34 = vpop.permute.xlu1 %132 }
  0x95   :  { %v528_v35 = vpop.permute.xlu0 %527  ;;  %1450 = vxpose.xlu0.c.b16.start [1/8] %v1943_v32, 128  ;;  %681 = vperm.xlu1 %1926, %v120_v22   ;;  %v141_v38 = vrot.slane %v133_v34, %v2176_v33 }
  0x96   :  { %v536_v36 = vrot.slane %v528_v35, %v2176_v33 }
  0x97   :  { %v418_v47 = vmul.bf16 %v141_v38, %v2184_v39 }
  0x98   :  { %v145_v40 = vpop.permute.xlu1 %144  ;;  %v790_v45 = vmul.bf16 %v536_v36, %v2184_v39 }
  0x99   :  { %v539_v42 = vpop.permute.xlu0 %538  ;;  %1451 = vxpose.xlu0.c.b16.cont [2/8] %v1945_v37, 128  ;;  %v153_v43 = vrot.slane %v145_v40, %v2176_v33  ;;  %1927 = vset.pattern.permute.xlu1 %v2006_v1 }
  0x9a   :  { %v547_v44 = vrot.slane %v539_v42, %v2176_v33  ;;  %300 = vperm.xlu1 %1927, %v120_v22  }
  0x9b   :  { %v419_v48 = vmul.bf16 %v153_v43, %v2189_v41 }
  0x9c   :  { %v791_v49 = vmul.bf16 %v547_v44, %v2189_v41 }
  0x9d   :  { %v561_v50 = vpop.permute.xlu0 %560  ;;  %1452 = vxpose.xlu0.c.b16.cont [3/8] %v1947_v46, 128  ;;  %v2198_v51 = vpop.permute.xlu1 %910  ;;  %v1830_v53 = vcombine.low %v418_v47, %v419_v48 }
  0x9e   :  { %v1842_v52 = vcombine.low %v790_v45, %v791_v49  ;;  %312 = vperm.xlu1 %1927, %v2087_v12   ;;  %v569_v55 = vrot.slane %v561_v50, %v2176_v33  ;;  %v919_v50 = vrot.slane %v2198_v51, %v2176_v33 }
  0xa0   :  { %1507 = vmatprep.subr.bf16.mxu0 %v1842_v52  ;;  %v793_v61 = vmul.bf16 %v569_v55, %v2205_v56 }
  0xa1   :  { %1508 = vmatpush1.bf16.msra.mxu0 %v1830_v53  ;;  %v583_v57 = vpop.permute.xlu0 %582  ;;  %1453 = vxpose.xlu0.c.b16.cont [4/8] %v1949_v54, 128  ;;  %v88_v53 = vld [vmem:[%s2454_s0 + $0x18] sm:$0xf] }
  0xa2   :  { %1928 = vset.pattern.permute.xlu1 %v2007_v6  ;;  %v550_v59 = vpop.permute.xlu1 %549  ;;  %v591_v27 = vrot.slane %v583_v57, %v2176_v33 }
  0xa3   :  { %v558_v62 = vrot.slane %v550_v59, %v2176_v33  ;;  %1064 = vperm.xlu1 %1928, %v2087_v12  }
  0xa4   :  { %v795_v31 = vmul.bf16 %v591_v27, %v2238_v28 }
  0xa5   :  { %v2216_v63 = vpop.permute.xlu0 %604  ;;  %1454 = vxpose.xlu0.c.b16.cont [5/8] %v1950_v58, 128  ;;  %v792_v2 = vmul.bf16 %v558_v62, %v2211_v60 }
  0xa6   :  { %v613_v49 = vrot.slane %v2216_v63, %v2176_v33 }
  0xa7   :  { %1929 = vset.pattern.permute.xlu1 %v2005_v0  ;;  %v157_v4 = vpop.permute.xlu1 %156  ;;  %v1843_v5 = vcombine.low %v792_v2, %v793_v61  ;;  %v1163_v61 = vmul.bf16 %v919_v50, %v2189_v41 }
  0xa8   :  { %703 = vperm.xlu1 %1929, %v2145_v23   ;;  %v165_v9 = vrot.slane %v157_v4, %v2176_v33 }
  0xa9   :  { %v2221_v7 = vpop.permute.xlu0 %626  ;;  %1455 = vxpose.xlu0.c.b16.cont [6/8] %v1951_v3, 128  ;;  %1509 = vmatprep.subr.bf16.mxu0 %v1843_v5 }
  0xaa   :  { %v420_v18 = vmul.bf16 %v165_v9, %v2211_v60 }
  0xab   :  { %v169_v10 = vpop.permute.xlu1 %168 }
  0xac   :  { %v177_v11 = vrot.slane %v169_v10, %v2176_v33  ;;  %1930 = vset.pattern.permute.xlu1 %v2006_v1 }
  0xad   :  { %v2226_v12 = vpop.permute.xlu0 %648  ;;  %1456 = vxpose.xlu0.c.b16.cont [7/8] %v1952_v8, 128  ;;  %324 = vperm.xlu1 %1930, %v2145_v23  }
  0xae   :  { %v421_v19 = vmul.bf16 %v177_v11, %v2205_v56 }
  0xb0   :  { %v933_v20 = vpop.permute.xlu1 %932  ;;  %v1831_v22 = vcombine.low %v420_v18, %v421_v19 }
  0xb1   :  { %v2231_v21 = vpop.permute.xlu0 %670  ;;  %1457 = vxpose.xlu0.c.b16.end [8/8] %v1953_v13, 128  ;;  %336 = vperm.xlu1 %1930, %v2097_v14   ;;  %v941_v51 = vrot.slane %v933_v20, %v2176_v33 }
  0xb2   :  { %1510 = vmatpush1.bf16.msra.mxu0 %v1831_v22 }
  0xb3   :  { %v1165_v5 = vmul.bf16 %v941_v51, %v2205_v56  ;;  %v92_v51 = vld [vmem:[%s2454_s0 + $0x28] sm:$0xf] }
  0xb5   :  { %v2240_v23 = vpop.permute.xlu0 %692  ;;  %1931 = vset.pattern.permute.xlu1 %v2007_v6  ;;  %v572_v29 = vpop.permute.xlu1 %571 }
  0xb6   :  { %v580_v32 = vrot.slane %v572_v29, %v2176_v33  ;;  %1086 = vperm.xlu1 %1931, %v2097_v14  }
  0xb8   :  { %v794_v34 = vmul.bf16 %v580_v32, %v2246_v30 }
  0xb9   :  { %v2252_v35 = vpop.permute.xlu0 %714 }
  0xba   :  { %1932 = vset.pattern.permute.xlu1 %v2005_v0  ;;  %v181_v36 = vpop.permute.xlu1 %180  ;;  %v1844_v37 = vcombine.low %v794_v34, %v795_v31 }
  0xbb   :  { %725 = vperm.xlu1 %1932, %v2151_v24   ;;  %v189_v40 = vrot.slane %v181_v36, %v2176_v33 }
  0xbc   :  { %1511 = vmatprep.subr.bf16.mxu0 %v1844_v37 }
  0xbd   :  { %v2256_v38 = vpop.permute.xlu0 %736  ;;  %v422_v44 = vmul.bf16 %v189_v40, %v2246_v30  ;;  %v90_v40 = vld [vmem:[%s2454_s0 + $0x20] sm:$0xf] }
  0xbe   :  { %v193_v42 = vpop.permute.xlu1 %192 }
  0xbf   :  { %v201_v43 = vrot.slane %v193_v42, %v2176_v33  ;;  %1933 = vset.pattern.permute.xlu1 %v2006_v1 }
  0xc0   :  { %348 = vperm.xlu1 %1933, %v2151_v24   ;;  %v89_v24 = vld [vmem:[%s2454_s0 + $0x1c] sm:$0xf] }
  0xc1   :  { %v2262_v14 = vpop.permute.xlu0 %758  ;;  %v423_v45 = vmul.bf16 %v201_v43, %v2238_v28  ;;  %v797_v54 = vmul.bf16 %v613_v49, %v89_v24 }
  0xc3   :  { %v955_v46 = vpop.permute.xlu1 %954  ;;  %v1832_v47 = vcombine.low %v422_v44, %v423_v45 }
  0xc4   :  { %360 = vperm.xlu1 %1933, %v2104_v15   ;;  %v963_v8 = vrot.slane %v955_v46, %v2176_v33 }
  0xc5   :  { %v2267_v48 = vpop.permute.xlu0 %780  ;;  %1512 = vmatpush1.bf16.msra.mxu0 %v1832_v47 }
  0xc6   :  { %v1167_v56 = vmul.bf16 %v963_v8, %v2238_v28 }
  0xc8   :  { %1934 = vset.pattern.permute.xlu1 %v2007_v6  ;;  %v594_v52 = vpop.permute.xlu1 %593 }
  0xc9   :  { %v602_v55 = vrot.slane %v594_v52, %v2176_v33  ;;  %1108 = vperm.xlu1 %1934, %v2104_v15  }
  0xca   :  { %v900_v57 = vpop.permute.xlu0 %899 }
  0xcb   :  { %v908_v58 = vrot.slane %v900_v57, %v2176_v33  ;;  %v796_v59 = vmul.bf16 %v602_v55, %v88_v53 }
  0xcd   :  { %v1162_v62 = vmul.bf16 %v908_v58, %v2184_v39  ;;  %1935 = vset.pattern.permute.xlu1 %v2005_v0  ;;  %v205_v63 = vpop.permute.xlu1 %204  ;;  %v1845_v3 = vcombine.low %v796_v59, %v797_v54  ;;  %v657_v58 = vrot.slane %v2226_v12, %v2176_v33  ;;  %v93_v59 = vld [vmem:[%s2454_s0 + $0x2c] sm:$0xf] }
  0xce   :  { %v922_v2 = vpop.permute.xlu0 %921  ;;  %747 = vperm.xlu1 %1935, %v2158_v25   ;;  %v213_v41 = vrot.slane %v205_v63, %v2176_v33 }
  0xcf   :  { %v930_v4 = vrot.slane %v922_v2, %v2176_v33  ;;  %v1854_v15 = vcombine.low %v1162_v62, %v1163_v61  ;;  %1513 = vmatprep.subr.bf16.mxu0 %v1845_v3  ;;  %v801_v63 = vmul.bf16 %v657_v58, %v93_v59  ;;  %v1948_v58 = vld [vmem:[#allocation3 + $0x58] sm:$0xff]  }
  0xd0   :  { %v424_v19 = vmul.bf16 %v213_v41, %v88_v53 }
  0xd1   :  { %v1164_v9 = vmul.bf16 %v930_v4, %v2211_v60  ;;  %1621 = vmatpush1.bf16.msra.mxu1 %v1854_v15  ;;  %v217_v39 = vpop.permute.xlu1 %216 }
  0xd2   :  { %v944_v10 = vpop.permute.xlu0 %943  ;;  %1622 = vmatprep.subr.bf16.mxu1 %v2006_v1  ;;  %v225_v11 = vrot.slane %v217_v39, %v2176_v33  ;;  %1936 = vset.pattern.permute.xlu1 %v2006_v1 }
  0xd3   :  { %v952_v13 = vrot.slane %v944_v10, %v2176_v33  ;;  %v1855_v18 = vcombine.low %v1164_v9, %v1165_v5  ;;  %372 = vperm.xlu1 %1936, %v2158_v25   ;;  %v635_v25 = vrot.slane %v2221_v7, %v2176_v33 }
  0xd4   :  { %v425_v20 = vmul.bf16 %v225_v11, %v89_v24 }
  0xd5   :  { %v1166_v60 = vmul.bf16 %v952_v13, %v2246_v30  ;;  %1623 = vmatpush1.bf16.msra.mxu1 %v1855_v18  ;;  %v91_v30 = vld [vmem:[%s2454_s0 + $0x24] sm:$0xf]  ;;  %v679_v18 = vrot.slane %v2231_v21, %v2176_v33 }
  0xd6   :  { %v966_v22 = vpop.permute.xlu0 %965  ;;  %1624 = vmatprep.subr.bf16.mxu1 %v2006_v1  ;;  %v977_v27 = vpop.permute.xlu1 %976  ;;  %v1833_v31 = vcombine.low %v424_v19, %v425_v20  ;;  %v799_v43 = vmul.bf16 %v635_v25, %v91_v30 }
  0xd7   :  { %v974_v29 = vrot.slane %v966_v22, %v2176_v33  ;;  %v1856_v32 = vcombine.low %v1166_v60, %v1167_v56  ;;  %v985_v34 = vrot.slane %v977_v27, %v2176_v33  ;;  %384 = vperm.xlu1 %1936, %v2110_v16   ;;  %v95_v56 = vld [vmem:[%s2454_s0 + $0x34] sm:$0xf]  ;;  %v94_v60 = vld [vmem:[%s2454_s0 + $0x30] sm:$0xf] }
  0xd8   :  { %1514 = vmatpush1.bf16.msra.mxu0 %v1833_v31  ;;  %v803_v27 = vmul.bf16 %v679_v18, %v95_v56 }
  0xd9   :  { %v1168_v28 = vmul.bf16 %v974_v29, %v88_v53  ;;  %1625 = vmatpush1.bf16.msra.mxu1 %v1856_v32  ;;  %v1169_v36 = vmul.bf16 %v985_v34, %v89_v24 }
  0xda   :  { %1626 = vmatprep.subr.bf16.mxu1 %v2006_v1  ;;  %v988_v49 = vpop.permute.xlu0 %987 }
  0xdb   :  { %1937 = vset.pattern.permute.xlu1 %v2007_v6  ;;  %v616_v37 = vpop.permute.xlu1 %615  ;;  %v1857_v42 = vcombine.low %v1168_v28, %v1169_v36 }
  0xdc   :  { %v624_v7 = vrot.slane %v616_v37, %v2176_v33  ;;  %1130 = vperm.xlu1 %1937, %v2110_v16   ;;  %v996_v16 = vrot.slane %v988_v49, %v2176_v33  ;;  %v701_v49 = vrot.slane %v2240_v23, %v2176_v33 }
  0xdd   :  { %1627 = vmatpush1.bf16.msra.mxu1 %v1857_v42  ;;  %v1942_v42 = vld [vmem:[#allocation3 + $0x40] sm:$0xff]  }
  0xde   :  { %v798_v44 = vmul.bf16 %v624_v7, %v90_v40  ;;  %1628 = vmatprep.subr.bf16.mxu1 %v2006_v1  ;;  %v1170_v57 = vmul.bf16 %v996_v16, %v90_v40  ;;  %v1010_v15 = vpop.permute.xlu0 %1009  ;;  %v96_v16 = vld [vmem:[%s2454_s0 + $0x38] sm:$0xf] }
  0xdf   :  { %v1018_v41 = vrot.slane %v1010_v15, %v2176_v33 }
  0xe0   :  { %1938 = vset.pattern.permute.xlu1 %v2005_v0  ;;  %v229_v45 = vpop.permute.xlu1 %228  ;;  %v1846_v46 = vcombine.low %v798_v44, %v799_v43 }
  0xe1   :  { %769 = vperm.xlu1 %1938, %v2165_v26   ;;  %v237_v47 = vrot.slane %v229_v45, %v2176_v33  ;;  %v1172_v13 = vmul.bf16 %v1018_v41, %v92_v51 }
  0xe2   :  { %1515 = vmatprep.subr.bf16.mxu0 %v1846_v46  ;;  %v1032_v25 = vpop.permute.xlu0 %1031 }
  0xe3   :  { %v426_v52 = vmul.bf16 %v237_v47, %v90_v40  ;;  %v1040_v36 = vrot.slane %v1032_v25, %v2176_v33  ;;  %v1944_v47 = vld [vmem:[#allocation3 + $0x48] sm:$0xff]   ;;  %v745_v25 = vrot.slane %v2256_v38, %v2176_v33 }
  0xe4   :  { %v241_v24 = vpop.permute.xlu1 %240 }
  0xe5   :  { %v249_v50 = vrot.slane %v241_v24, %v2176_v33  ;;  %1940 = vset.pattern.permute.xlu1 %v2006_v1  ;;  %v1174_v45 = vmul.bf16 %v1040_v36, %v94_v60  ;;  %v97_v24 = vld [vmem:[%s2454_s0 + $0x3c] sm:$0xf]  ;;  %v100_v36 = vld [vmem:[%s2454_s0 + $0x48] sm:$0xf] }
  0xe6   :  { %396 = vperm.xlu1 %1940, %v2165_v26  }
  0xe7   :  { %v427_v53 = vmul.bf16 %v249_v50, %v91_v30 }
  0xe9   :  { %v999_v0 = vpop.permute.xlu1 %998  ;;  %v1834_v54 = vcombine.low %v426_v52, %v427_v53 }
  0xea   :  { %v1007_v55 = vrot.slane %v999_v0, %v2176_v33  ;;  %408 = vperm.xlu1 %1940, %v2116_v17   ;;  %v1946_v0 = vld [vmem:[#allocation3 + $0x50] sm:$0xff]  }
  0xeb   :  { %1516 = vmatpush1.bf16.msra.mxu0 %v1834_v54  ;;  %v805_v54 = vmul.bf16 %v701_v49, %v97_v24 }
  0xec   :  { %v1171_v26 = vmul.bf16 %v1007_v55, %v91_v30 }
  0xee   :  { %1941 = vset.pattern.permute.xlu1 %v2007_v6  ;;  %v638_v61 = vpop.permute.xlu1 %637  ;;  %v1858_v62 = vcombine.low %v1170_v57, %v1171_v26  ;;  %v1054_v26 = vpop.permute.xlu0 %1053 }
  0xef   :  { %v646_v2 = vrot.slane %v638_v61, %v2176_v33  ;;  %1152 = vperm.xlu1 %1941, %v2116_v17  }
  0xf0   :  { %1629 = vmatpush1.bf16.msra.mxu1 %v1858_v62  ;;  %v1062_v62 = vrot.slane %v1054_v26, %v2176_v33  ;;  %v102_v26 = vld [vmem:[%s2454_s0 + $0x50] sm:$0xf] }
  0xf1   :  { %v800_v12 = vmul.bf16 %v646_v2, %v92_v51  ;;  %1630 = vmatprep.subr.bf16.mxu1 %v2006_v1 }
  0xf3   :  { %v253_v3 = vpop.permute.xlu1 %252  ;;  %v1847_v4 = vcombine.low %v800_v12, %v801_v63 }
  0xf4   :  { %v261_v6 = vrot.slane %v253_v3, %v2176_v33 }
  0xf5   :  { %1517 = vmatprep.subr.bf16.mxu0 %v1847_v4 }
  0xf6   :  { %v428_v9 = vmul.bf16 %v261_v6, %v92_v51  ;;  %v1176_v6 = vmul.bf16 %v1062_v62, %v96_v16 }
  0xf7   :  { %v265_v5 = vpop.permute.xlu1 %264 }
  0xf8   :  { %v273_v8 = vrot.slane %v265_v5, %v2176_v33  ;;  %v723_v5 = vrot.slane %v2252_v35, %v2176_v33 }
  0xfa   :  { %v429_v39 = vmul.bf16 %v273_v8, %v93_v59  ;;  %v99_v8 = vld [vmem:[%s2454_s0 + $0x44] sm:$0xf] }
  0xfc   :  { %v1021_v10 = vpop.permute.xlu1 %1020  ;;  %v1835_v11 = vcombine.low %v428_v9, %v429_v39  ;;  %v98_v9 = vld [vmem:[%s2454_s0 + $0x40] sm:$0xf] }
  0xfd   :  { %v1029_v17 = vrot.slane %v1021_v10, %v2176_v33 }
  0xfe   :  { %1518 = vmatpush1.bf16.msra.mxu0 %v1835_v11  ;;  %v807_v11 = vmul.bf16 %v723_v5, %v99_v8 }
  0xff   :  { %v1173_v19 = vmul.bf16 %v1029_v17, %v93_v59 }
 0x101   :  { %v660_v20 = vpop.permute.xlu1 %659  ;;  %v1859_v22 = vcombine.low %v1172_v13, %v1173_v19 }
 0x102   :  { %v668_v29 = vrot.slane %v660_v20, %v2176_v33 }
 0x103   :  { %1631 = vmatpush1.bf16.msra.mxu1 %v1859_v22 }
 0x104   :  { %v802_v31 = vmul.bf16 %v668_v29, %v94_v60  ;;  %1632 = vmatprep.subr.bf16.mxu1 %v2006_v1 }
 0x106   :  { %v277_v21 = vpop.permute.xlu1 %276  ;;  %v1848_v32 = vcombine.low %v802_v31, %v803_v27 }
 0x107   :  { %v285_v34 = vrot.slane %v277_v21, %v2176_v33 }
 0x108   :  { %1519 = vmatprep.subr.bf16.mxu0 %v1848_v32 }
 0x109   :  { %v430_v37 = vmul.bf16 %v285_v34, %v94_v60 }
 0x10a   :  { %v289_v28 = vpop.permute.xlu1 %288 }
 0x10b   :  { %v297_v30 = vrot.slane %v289_v28, %v2176_v33  ;;  %v101_v28 = vld [vmem:[%s2454_s0 + $0x4c] sm:$0xf] }
 0x10d   :  { %v431_v40 = vmul.bf16 %v297_v30, %v95_v56 }
 0x10f   :  { %v1043_v43 = vpop.permute.xlu1 %1042  ;;  %v1836_v7 = vcombine.low %v430_v37, %v431_v40 }
 0x110   :  { %v1051_v44 = vrot.slane %v1043_v43, %v2176_v33 }
 0x111   :  { %1520 = vmatpush1.bf16.msra.mxu0 %v1836_v7 }
 0x112   :  { %v1175_v46 = vmul.bf16 %v1051_v44, %v95_v56  ;;  %1466 = vxpose.xlu1.c.b16.start [1/4] (short) %v1942_v42, 128  ;;  %v1076_v56 = vpop.permute.xlu0 %1075  ;;  %v809_v42 = vmul.bf16 %v745_v25, %v101_v28 }
 0x113   :  { %v1084_v60 = vrot.slane %v1076_v56, %v2176_v33 }
 0x114   :  { %v682_v50 = vpop.permute.xlu1 %681  ;;  %v1860_v52 = vcombine.low %v1174_v45, %v1175_v46 }
 0x115   :  { %v690_v53 = vrot.slane %v682_v50, %v2176_v33  ;;  %v1178_v32 = vmul.bf16 %v1084_v60, %v98_v9 }
 0x116   :  { %1467 = vxpose.xlu1.c.b16.cont [2/4] (short) %v1944_v47, 128  ;;  %1633 = vmatpush1.bf16.msra.mxu1 %v1860_v52  ;;  %v1098_v47 = vpop.permute.xlu0 %1097 }
 0x117   :  { %v804_v55 = vmul.bf16 %v690_v53, %v96_v16  ;;  %1634 = vmatprep.subr.bf16.mxu1 %v2006_v1  ;;  %v1106_v50 = vrot.slane %v1098_v47, %v2176_v33 }
 0x119   :  { %v301_v23 = vpop.permute.xlu1 %300  ;;  %v1849_v57 = vcombine.low %v804_v55, %v805_v54  ;;  %v767_v55 = vrot.slane %v2262_v14, %v2176_v33 }
 0x11a   :  { %1468 = vxpose.xlu1.c.b16.cont [3/4] (short) %v1946_v0, 128  ;;  %v309_v59 = vrot.slane %v301_v23, %v2176_v33  ;;  %v1180_v0 = vmul.bf16 %v1106_v50, %v100_v36  ;;  %v103_v23 = vld [vmem:[%s2454_s0 + $0x54] sm:$0xf] }
 0x11b   :  { %1521 = vmatprep.subr.bf16.mxu0 %v1849_v57 }
 0x11c   :  { %v432_v63 = vmul.bf16 %v309_v59, %v96_v16 }
 0x11d   :  { %v313_v61 = vpop.permute.xlu1 %312 }
 0x11e   :  { %v321_v51 = vrot.slane %v313_v61, %v2176_v33  ;;  %1469 = vxpose.xlu1.c.b16.end [4/4] (short) %v1948_v58, 128  ;;  %v811_v61 = vmul.bf16 %v767_v55, %v103_v23 }
 0x120   :  { %v433_v2 = vmul.bf16 %v321_v51, %v97_v24 }
 0x122   :  { %v1065_v12 = vpop.permute.xlu1 %1064  ;;  %v1837_v3 = vcombine.low %v432_v63, %v433_v2 }
 0x123   :  { %v1073_v4 = vrot.slane %v1065_v12, %v2176_v33 }
 0x124   :  { %1522 = vmatpush1.bf16.msra.mxu0 %v1837_v3  ;;  %v1120_v3 = vpop.permute.xlu0 %1119 }
 0x125   :  { %v1177_v15 = vmul.bf16 %v1073_v4, %v97_v24 }
 0x127   :  { %v704_v41 = vpop.permute.xlu1 %703  ;;  %v1861_v39 = vcombine.low %v1176_v6, %v1177_v15  ;;  %v1128_v15 = vrot.slane %v1120_v3, %v2176_v33 }
 0x128   :  { %v712_v10 = vrot.slane %v704_v41, %v2176_v33 }
 0x129   :  { %1635 = vmatpush1.bf16.msra.mxu1 %v1861_v39 }
 0x12a   :  { %v806_v17 = vmul.bf16 %v712_v10, %v98_v9  ;;  %1636 = vmatprep.subr.bf16.mxu1 %v2006_v1  ;;  %v789_v10 = vrot.slane %v2267_v48, %v2176_v33 }
 0x12c   :  { %v325_v13 = vpop.permute.xlu1 %324  ;;  %v1850_v18 = vcombine.low %v806_v17, %v807_v11  ;;  %v105_v11 = vld [vmem:[%s2454_s0 + $0x5c] sm:$0xf] }
 0x12d   :  { %v333_v35 = vrot.slane %v325_v13, %v2176_v33  ;;  %v813_v56 = vmul.bf16 %v789_v10, %v105_v11 }
 0x12e   :  { %1523 = vmatprep.subr.bf16.mxu0 %v1850_v18 }
 0x12f   :  { %v434_v22 = vmul.bf16 %v333_v35, %v98_v9  ;;  %v1182_v9 = vmul.bf16 %v1128_v15, %v102_v26  ;;  %v104_v35 = vld [vmem:[%s2454_s0 + $0x58] sm:$0xf]  ;;  %s2009_s0 = smov [#allocation6]  }
 0x130   :  { %v337_v19 = vpop.permute.xlu1 %336  ;;  %s1818_s8 = sshll.u32 %s2009_s0, 4  ;;  %s1819_s8 = int_to_ptr.vmem [resolvable:$true] %s1818_s8 }
 0x131   :  { %v345_v20 = vrot.slane %v337_v19, %v2176_v33  ;;  %s1976_s9 = scalar_lea.vmem %s1819_s8, 6144  ;;  %p1981_p9 = scmp.lt.s32.totalorder %s1819_s8, %s1819_s8 }
 0x132   :  { %p1977_p8 = scmp.ne.s32.totalorder %s1819_s8, %s1976_s9  ;;  %p1982_p10 = scmp.lt.s32.totalorder %s1976_s9, %s1976_s9 }
 0x133   :  { %v435_v27 = vmul.bf16 %v345_v20, %v99_v8 }
 0x134   :  { %p1983_p11 = por %p1982_p10, %p1981_p9 }
 0x135   :  { %v1087_v29 = vpop.permute.xlu1 %1086  ;;  %v1838_v31 = vcombine.low %v434_v22, %v435_v27  ;;  %v1142_v27 = vpop.permute.xlu0 %1141 }
 0x136   :  { %v1095_v21 = vrot.slane %v1087_v29, %v2176_v33  ;;  %p1984_p12 = pnand %p1983_p11, %p1977_p8 }
 0x137   :  { %1524 = vmatpush1.bf16.msra.mxu0 %v1838_v31 }
 0x138   :  { %v1179_v34 = vmul.bf16 %v1095_v21, %v99_v8 }
 0x13a   :  { %v726_v30 = vpop.permute.xlu1 %725  ;;  %v1862_v37 = vcombine.low %v1178_v32, %v1179_v34  ;;  %v1150_v32 = vrot.slane %v1142_v27, %v2176_v33 }
 0x13b   :  { %v734_v40 = vrot.slane %v726_v30, %v2176_v33 }
 0x13c   :  { %1637 = vmatpush1.bf16.msra.mxu1 %v1862_v37  ;;  %v1184_v30 = vmul.bf16 %v1150_v32, %v104_v35  ;;  %v1458_v37 = vpop.trf.xlu0 }
 0x13d   :  { %v808_v43 = vmul.bf16 %v734_v40, %v100_v36  ;;  %1638 = vmatprep.subr.bf16.mxu1 %v2006_v1 }
 0x13f   :  { %v349_v7 = vpop.permute.xlu1 %348  ;;  %v1851_v44 = vcombine.low %v808_v43, %v809_v42 }
 0x140   :  { %v357_v38 = vrot.slane %v349_v7, %v2176_v33 }
 0x141   :  { %1525 = vmatprep.subr.bf16.mxu0 %v1851_v44 }
 0x142   :  { %v436_v49 = vmul.bf16 %v357_v38, %v100_v36 }
 0x143   :  { %v361_v45 = vpop.permute.xlu1 %360 }
 0x144   :  { %v369_v46 = vrot.slane %v361_v45, %v2176_v33 }
 0x146   :  { %v437_v24 = vmul.bf16 %v369_v46, %v101_v28 }
 0x148   :  { %v1109_v16 = vpop.permute.xlu1 %1108  ;;  %v1839_v52 = vcombine.low %v436_v49, %v437_v24 }
 0x149   :  { %v1117_v53 = vrot.slane %v1109_v16, %v2176_v33 }
 0x14a   :  { %1526 = vmatpush1.bf16.msra.mxu0 %v1839_v52 }
 0x14b   :  { %v1181_v54 = vmul.bf16 %v1117_v53, %v101_v28 }
 0x14d   :  { %v748_v57 = vpop.permute.xlu1 %747  ;;  %v1863_v58 = vcombine.low %v1180_v0, %v1181_v54 }
 0x14e   :  { %v756_v59 = vrot.slane %v748_v57, %v2176_v33 }
 0x14f   :  { %1639 = vmatpush1.bf16.msra.mxu1 %v1863_v58 }
 0x150   :  { %v810_v51 = vmul.bf16 %v756_v59, %v102_v26  ;;  %1640 = vmatprep.subr.bf16.mxu1 %v2006_v1 }
 0x152   :  { %v373_v62 = vpop.permute.xlu1 %372  ;;  %v1852_v63 = vcombine.low %v810_v51, %v811_v61 }
 0x153   :  { %v381_v14 = vrot.slane %v373_v62, %v2176_v33 }
 0x154   :  { %1527 = vmatprep.subr.bf16.mxu0 %v1852_v63 }
 0x155   :  { %v438_v4 = vmul.bf16 %v381_v14, %v102_v26 }
 0x156   :  { %v385_v2 = vpop.permute.xlu1 %384 }
 0x157   :  { %v393_v12 = vrot.slane %v385_v2, %v2176_v33 }
 0x159   :  { %v439_v6 = vmul.bf16 %v393_v12, %v103_v23 }
 0x15b   :  { %v1131_v5 = vpop.permute.xlu1 %1130  ;;  %v1840_v8 = vcombine.low %v438_v4, %v439_v6 }
 0x15c   :  { %v1139_v41 = vrot.slane %v1131_v5, %v2176_v33 }
 0x15d   :  { %1528 = vmatpush1.bf16.msra.mxu0 %v1840_v8 }
 0x15e   :  { %v1183_v39 = vmul.bf16 %v1139_v41, %v103_v23 }
 0x160   :  { %v770_v17 = vpop.permute.xlu1 %769  ;;  %v1864_v13 = vcombine.low %v1182_v9, %v1183_v39 }
 0x161   :  { %v778_v18 = vrot.slane %v770_v17, %v2176_v33 }
 0x162   :  { %1641 = vmatpush1.bf16.msra.mxu1 %v1864_v13 }
 0x163   :  { %v812_v19 = vmul.bf16 %v778_v18, %v104_v35  ;;  %1642 = vmatprep.subr.bf16.mxu1 %v2006_v1 }
 0x165   :  { %v397_v20 = vpop.permute.xlu1 %396  ;;  %v1853_v60 = vcombine.low %v812_v19, %v813_v56 }
 0x166   :  { %v405_v48 = vrot.slane %v397_v20, %v2176_v33 }
 0x167   :  { %1529 = vmatprep.subr.bf16.mxu0 %v1853_v60 }
 0x168   :  { %v440_v31 = vmul.bf16 %v405_v48, %v104_v35 }
 0x169   :  { %v409_v22 = vpop.permute.xlu1 %408 }
 0x16a   :  { %v417_v29 = vrot.slane %v409_v22, %v2176_v33 }
 0x16c   :  { %v441_v21 = vmul.bf16 %v417_v29, %v105_v11 }
 0x16e   :  { %v1153_v34 = vpop.permute.xlu1 %1152  ;;  %v1841_v25 = vcombine.low %v440_v31, %v441_v21 }
 0x16f   :  { %v1161_v28 = vrot.slane %v1153_v34, %v2176_v33  ;;  %v1459_v33 = vpop.trf.xlu0 }
 0x170   :  { %1530 = vmatpush1.bf16.msra.mxu0 %v1841_v25 }
 0x171   :  { %v1185_v1 = vmul.bf16 %v1161_v28, %v105_v11 }
 0x173   :  { %v1865_v36 = vcombine.low %v1184_v30, %v1185_v1  ;;  %v1460_v7 = vpop.trf.xlu0 }
 0x175   :  { %1643 = vmatpush1.bf16.msra.mxu1 %v1865_v36 }
 0x177   :  { %v1461_v38 = vpop.trf.xlu0 }
 0x178   :  { %v1474_v40 = vpop.trf.xlu1 }
 0x179   :  { %1878 = vmatprep.mubr.msk.bf16.mxu0 %vm1482_vm0, %v1474_v40  ;;  %1886 = vmatprep.mubr.msk.bf16.mxu1 %vm1482_vm0, %v1474_v40 }
 0x17a   :  { %1540 = vmatmul.mubr.bf16.vlgmr.msra.gmra.mrb[0].mxu0 %v1458_v37  ;;  %1653 = vmatmul.mubr.bf16.vlgmr.msra.gmra.mrb[0].mxu1 %v1458_v37 }
 0x17b   :  { %v1462_v46 = vpop.trf.xlu0 }
 0x17c   :  { %v1475_v42 = vpop.trf.xlu1 }
 0x17d   :  { %1879 = vmatprep.mubr.msk.bf16.mxu0 %vm1482_vm0, %v1475_v42  ;;  %1887 = vmatprep.mubr.msk.bf16.mxu1 %vm1482_vm0, %v1475_v42 }
 0x17f   :  { %v1463_v49 = vpop.trf.xlu0 }
 0x180   :  { %v1476_v43 = vpop.trf.xlu1 }
 0x182   :  { %1550 = vmatmul.mubr.bf16.gmra.mrb[4].mxu0 %v1459_v33  ;;  %1661 = vmatmul.mubr.bf16.gmra.mrb[4].mxu1 %v1459_v33 }
 0x183   :  { %1880 = vmatprep.mubr.msk.bf16.mxu0 %vm1482_vm0, %v1476_v43  ;;  %1888 = vmatprep.mubr.msk.bf16.mxu1 %vm1482_vm0, %v1476_v43  ;;  %v1464_v50 = vpop.trf.xlu0 }
 0x184   :  { %v1477_v44 = vpop.trf.xlu1 }
 0x187   :  { %v1465_v52 = vpop.trf.xlu0 }
 0x188   :  { %v1478_v45 = vpop.trf.xlu1 }
 0x18a   :  { %1560 = vmatmul.mubr.bf16.gmra.mrb[8].mxu0 %v1460_v7  ;;  %1669 = vmatmul.mubr.bf16.gmra.mrb[8].mxu1 %v1460_v7 }
 0x18b   :  { %1881 = vmatprep.mubr.msk.bf16.mxu0 %vm1482_vm0, %v1477_v44  ;;  %1889 = vmatprep.mubr.msk.bf16.mxu1 %vm1482_vm0, %v1477_v44 }
 0x18c   :  { %v1479_v47 = vpop.trf.xlu1 }
 0x190   :  { %v1480_v24 = vpop.trf.xlu1 }
 0x192   :  { %1570 = vmatmul.mubr.bf16.gmra.mrb[12].mxu0 %v1461_v38  ;;  %1677 = vmatmul.mubr.bf16.gmra.mrb[12].mxu1 %v1461_v38 }
 0x193   :  { %1882 = vmatprep.mubr.msk.bf16.mxu0 %vm1482_vm0, %v1478_v45  ;;  %1890 = vmatprep.mubr.msk.bf16.mxu1 %vm1482_vm0, %v1478_v45 }
 0x194   :  { %v1481_v16 = vpop.trf.xlu1 }
 0x19a   :  { %1580 = vmatmul.mubr.bf16.gmra.mrb[16].mxu0 %v1462_v46  ;;  %1685 = vmatmul.mubr.bf16.gmra.mrb[16].mxu1 %v1462_v46 }
 0x19b   :  { %1883 = vmatprep.mubr.msk.bf16.mxu0 %vm1482_vm0, %v1479_v47  ;;  %1891 = vmatprep.mubr.msk.bf16.mxu1 %vm1482_vm0, %v1479_v47 }
 0x1a2   :  { %1590 = vmatmul.mubr.bf16.gmra.mrb[20].mxu0 %v1463_v49  ;;  %1693 = vmatmul.mubr.bf16.gmra.mrb[20].mxu1 %v1463_v49 }
 0x1a3   :  { %1884 = vmatprep.mubr.msk.bf16.mxu0 %vm1482_vm0, %v1480_v24  ;;  %1892 = vmatprep.mubr.msk.bf16.mxu1 %vm1482_vm0, %v1480_v24 }
 0x1aa   :  { %1600 = vmatmul.mubr.bf16.gmra.mrb[24].mxu0 %v1464_v50  ;;  %1701 = vmatmul.mubr.bf16.gmra.mrb[24].mxu1 %v1464_v50 }
 0x1ab   :  { %1885 = vmatprep.mubr.msk.bf16.mxu0 %vm1482_vm0, %v1481_v16  ;;  %1893 = vmatprep.mubr.msk.bf16.mxu1 %vm1482_vm0, %v1481_v16 }
 0x1b2   :  { %1610 = vmatmul.mubr.bf16.gmra.mrb[28].mxu0 %v1465_v52  ;;  %1709 = vmatmul.mubr.bf16.gmra.mrb[28].mxu1 %v1465_v52 }
 0x24d   :  { %v1541_v53 = vpop.f32.mrb[0].mxu0  ;;  %v1654_v0 = vpop.f32.mrb[0].mxu1 }
 0x24e   :  { %v1543_v54 = vpop.f32.mrb[1].mxu0  ;;  %v1656_v55 = vpop.f32.mrb[1].mxu1  ;;  %1765 = vst [vmem:[#allocation6] sm:$0xff] %v1541_v53  ;;  %1767 = vst [vmem:[#allocation6 + $0x10] sm:$0xff] %v1654_v0 }
 0x24f   :  { %v1545_v23 = vpop.f32.mrb[2].mxu0  ;;  %v1657_v57 = vpop.f32.mrb[2].mxu1  ;;  %1766 = vst [vmem:[#allocation6 + $0x8] sm:$0xff] %v1543_v54 }
 0x250   :  { %v1547_v58 = vpop.f32.mrb[3].mxu0  ;;  %v1659_v59 = vpop.f32.mrb[3].mxu1  ;;  %1768 = vst [vmem:[#allocation6 + $0x18] sm:$0xff] %v1545_v23  ;;  %1770 = vst [vmem:[#allocation6 + $0x28] sm:$0xff] %v1657_v57 }
 0x251   :  { %1769 = vst [vmem:[#allocation6 + $0x20] sm:$0xff] %v1547_v58 }
 0x255   :  { %v1551_v26 = vpop.f32.mrb[4].mxu0  ;;  %v1662_v61 = vpop.f32.mrb[4].mxu1 }
 0x256   :  { %v1553_v51 = vpop.f32.mrb[5].mxu0  ;;  %v1664_v62 = vpop.f32.mrb[5].mxu1  ;;  %1771 = vst [vmem:[#allocation6 + $0x30] sm:$0xff] %v1551_v26  ;;  %1773 = vst [vmem:[#allocation6 + $0x40] sm:$0xff] %v1662_v61 }
 0x257   :  { %v1555_v63 = vpop.f32.mrb[6].mxu0  ;;  %v1665_v14 = vpop.f32.mrb[6].mxu1  ;;  %1772 = vst [vmem:[#allocation6 + $0x38] sm:$0xff] %v1553_v51 }
 0x258   :  { %v1557_v2 = vpop.f32.mrb[7].mxu0  ;;  %v1667_v12 = vpop.f32.mrb[7].mxu1  ;;  %1774 = vst [vmem:[#allocation6 + $0x48] sm:$0xff] %v1555_v63  ;;  %1776 = vst [vmem:[#allocation6 + $0x58] sm:$0xff] %v1665_v14 }
 0x259   :  { %1775 = vst [vmem:[#allocation6 + $0x50] sm:$0xff] %v1557_v2 }
 0x25d   :  { %v1561_v3 = vpop.f32.mrb[8].mxu0  ;;  %v1670_v4 = vpop.f32.mrb[8].mxu1 }
 0x25e   :  { %v1563_v6 = vpop.f32.mrb[9].mxu0  ;;  %v1672_v15 = vpop.f32.mrb[9].mxu1  ;;  %1777 = vst [vmem:[#allocation6 + $0x60] sm:$0xff] %v1561_v3  ;;  %1779 = vst [vmem:[#allocation6 + $0x70] sm:$0xff] %v1670_v4 }
 0x25f   :  { %v1565_v5 = vpop.f32.mrb[10].mxu0  ;;  %v1673_v8 = vpop.f32.mrb[10].mxu1  ;;  %1778 = vst [vmem:[#allocation6 + $0x68] sm:$0xff] %v1563_v6 }
 0x260   :  { %v1567_v41 = vpop.f32.mrb[11].mxu0  ;;  %v1675_v9 = vpop.f32.mrb[11].mxu1  ;;  %1780 = vst [vmem:[#allocation6 + $0x78] sm:$0xff] %v1565_v5  ;;  %1782 = vst [vmem:[#allocation6 + $0x88] sm:$0xff] %v1673_v8 }
 0x261   :  { %1781 = vst [vmem:[#allocation6 + $0x80] sm:$0xff] %v1567_v41 }
 0x265   :  { %v1571_v39 = vpop.f32.mrb[12].mxu0  ;;  %v1678_v10 = vpop.f32.mrb[12].mxu1 }
 0x266   :  { %v1573_v11 = vpop.f32.mrb[13].mxu0  ;;  %v1680_v17 = vpop.f32.mrb[13].mxu1  ;;  %1783 = vst [vmem:[#allocation6 + $0x90] sm:$0xff] %v1571_v39  ;;  %1785 = vst [vmem:[#allocation6 + $0xa0] sm:$0xff] %v1678_v10 }
 0x267   :  { %v1575_v13 = vpop.f32.mrb[14].mxu0  ;;  %v1681_v18 = vpop.f32.mrb[14].mxu1  ;;  %1784 = vst [vmem:[#allocation6 + $0x98] sm:$0xff] %v1573_v11 }
 0x268   :  { %v1577_v35 = vpop.f32.mrb[15].mxu0  ;;  %v1683_v56 = vpop.f32.mrb[15].mxu1  ;;  %1786 = vst [vmem:[#allocation6 + $0xa8] sm:$0xff] %v1575_v13  ;;  %1788 = vst [vmem:[#allocation6 + $0xb8] sm:$0xff] %v1681_v18 }
 0x269   :  { %1787 = vst [vmem:[#allocation6 + $0xb0] sm:$0xff] %v1577_v35 }
 0x26d   :  { %v1581_v19 = vpop.f32.mrb[16].mxu0  ;;  %v1686_v20 = vpop.f32.mrb[16].mxu1 }
 0x26e   :  { %v1583_v60 = vpop.f32.mrb[17].mxu0  ;;  %v1688_v48 = vpop.f32.mrb[17].mxu1  ;;  %1789 = vst [vmem:[#allocation6 + $0xc0] sm:$0xff] %v1581_v19  ;;  %1791 = vst [vmem:[#allocation6 + $0xd0] sm:$0xff] %v1686_v20 }
 0x26f   :  { %v1585_v22 = vpop.f32.mrb[18].mxu0  ;;  %v1689_v27 = vpop.f32.mrb[18].mxu1  ;;  %1790 = vst [vmem:[#allocation6 + $0xc8] sm:$0xff] %v1583_v60 }
 0x270   :  { %v1587_v29 = vpop.f32.mrb[19].mxu0  ;;  %v1691_v31 = vpop.f32.mrb[19].mxu1  ;;  %1792 = vst [vmem:[#allocation6 + $0xd8] sm:$0xff] %v1585_v22  ;;  %1794 = vst [vmem:[#allocation6 + $0xe8] sm:$0xff] %v1689_v27 }
 0x271   :  { %1793 = vst [vmem:[#allocation6 + $0xe0] sm:$0xff] %v1587_v29 }
 0x275   :  { %v1591_v21 = vpop.f32.mrb[20].mxu0  ;;  %v1694_v32 = vpop.f32.mrb[20].mxu1 }
 0x276   :  { %v1593_v34 = vpop.f32.mrb[21].mxu0  ;;  %v1696_v25 = vpop.f32.mrb[21].mxu1  ;;  %1795 = vst [vmem:[#allocation6 + $0xf0] sm:$0xff] %v1591_v21  ;;  %1797 = vst [vmem:[#allocation6 + $0x100] sm:$0xff] %v1694_v32 }
 0x277   :  { %v1595_v28 = vpop.f32.mrb[22].mxu0  ;;  %v1697_v30 = vpop.f32.mrb[22].mxu1  ;;  %1796 = vst [vmem:[#allocation6 + $0xf8] sm:$0xff] %v1593_v34 }
 0x278   :  { %v1597_v1 = vpop.f32.mrb[23].mxu0  ;;  %v1699_v36 = vpop.f32.mrb[23].mxu1  ;;  %1798 = vst [vmem:[#allocation6 + $0x108] sm:$0xff] %v1595_v28  ;;  %1800 = vst [vmem:[#allocation6 + $0x118] sm:$0xff] %v1697_v30 }
 0x279   :  { %1799 = vst [vmem:[#allocation6 + $0x110] sm:$0xff] %v1597_v1 }
 0x27d   :  { %v1601_v37 = vpop.f32.mrb[24].mxu0  ;;  %v1702_v40 = vpop.f32.mrb[24].mxu1 }
 0x27e   :  { %v1603_v42 = vpop.f32.mrb[25].mxu0  ;;  %v1704_v33 = vpop.f32.mrb[25].mxu1  ;;  %1801 = vst [vmem:[#allocation6 + $0x120] sm:$0xff] %v1601_v37  ;;  %1803 = vst [vmem:[#allocation6 + $0x130] sm:$0xff] %v1702_v40 }
 0x27f   :  { %v1605_v43 = vpop.f32.mrb[26].mxu0  ;;  %v1705_v7 = vpop.f32.mrb[26].mxu1  ;;  %1802 = vst [vmem:[#allocation6 + $0x128] sm:$0xff] %v1603_v42 }
 0x280   :  { %v1607_v44 = vpop.f32.mrb[27].mxu0  ;;  %v1707_v38 = vpop.f32.mrb[27].mxu1  ;;  %1804 = vst [vmem:[#allocation6 + $0x138] sm:$0xff] %v1605_v43  ;;  %1806 = vst [vmem:[#allocation6 + $0x148] sm:$0xff] %v1705_v7 }
 0x281   :  { %1805 = vst [vmem:[#allocation6 + $0x140] sm:$0xff] %v1607_v44 }
 0x285   :  { %v1611_v45 = vpop.f32.mrb[28].mxu0  ;;  %v1710_v46 = vpop.f32.mrb[28].mxu1 }
 0x286   :  { %v1613_v47 = vpop.f32.mrb[29].mxu0  ;;  %v1712_v49 = vpop.f32.mrb[29].mxu1  ;;  %1807 = vst [vmem:[#allocation6 + $0x150] sm:$0xff] %v1611_v45  ;;  %1809 = vst [vmem:[#allocation6 + $0x160] sm:$0xff] %v1710_v46 }
 0x287   :  { %v1615_v24 = vpop.f32.mrb[30].mxu0  ;;  %v1713_v50 = vpop.f32.mrb[30].mxu1  ;;  %1808 = vst [vmem:[#allocation6 + $0x158] sm:$0xff] %v1613_v47 }
 0x288   :  { %v1617_v16 = vpop.f32.mrb[31].mxu0  ;;  %v1715_v52 = vpop.f32.mrb[31].mxu1  ;;  %1810 = vst [vmem:[#allocation6 + $0x168] sm:$0xff] %v1615_v24  ;;  %1812 = vst [vmem:[#allocation6 + $0x178] sm:$0xff] %v1713_v50 }
 0x289   :  { %1811 = vst [vmem:[#allocation6 + $0x170] sm:$0xff] %v1617_v16 }
 0x28a   :  { %1987 = shalt.err (!%p1984_p12)
}
 0x28b   :  { %s1988_s12 = scalar_lea.hbm %s2457_s3, 6144 }
 0x28c   :  { %p1989_p13 = scmp.ne.s32.totalorder %s2457_s3, %s1988_s12  ;;  %p1992_p0 = scmp.lt.u32.totalorder %s1988_s12, %s2457_s3 }
 0x28e   :  { %p1994_p1 = pnand %p1992_p0, %p1989_p13 }
 0x290   :  { %1997 = shalt.err (!%p1994_p1)
}
 0x291   :  { %s2010_s17 = smov 384   ;;  %s2011_s2 = smov 24  }
 0x292   :  { %1824 = dma.vmem_to_hbm [thread:$0]  %s1819_s8, 6144, %s2457_s3, [#allocation5], %s2010_s17, %s2010_s17, %s2011_s2  }
 0x293   :  { %2000 = dma.done.wait [#allocation5], 6144  }
 0x294   :  { %2001 = vsyncadd [#allocation5], 4294961152 }
 0x295   :  { %1828 = vsyncpa [#allocation4], 1 }
 0x296   :  { %1829 = vsyncpa [#allocation5], 1 }

</bundles_post_ra>
